<compile_context>
chip_gen: v5e
topology: v5e:2x2
jax: 0.10.0
libtpu: 0.0.40
codegen_flags: <defaults>
</compile_context>

<pallas_src>
import functools

import jax
import jax.numpy as jnp
from jax.experimental import pallas as pl
from jax.experimental.pallas import tpu as pltpu

LANE = 128


def _round_up(x, m):
    return (x + m - 1) // m * m


def _cdiv(a, b):
    return (a + b - 1) // b


# ----------------------------------------------------------------------------
# Kernel
# ----------------------------------------------------------------------------
def _head_kernel(x_ref, w_ref, b_ref, tgt_ref, out_ref, acc_ref):
    # x_ref:   VMEM (tm, tk)    bf16  raw flattened pixels (normalize folded into W)
    # w_ref:   VMEM (tk, n_pad) bf16  folded + padded weights
    # b_ref:   VMEM (1, n_pad)  f32   folded bias; padded classes = -1e30
    # tgt_ref: VMEM (1, 128)    i32   lane t = target class id (padding lanes = -1)
    # out_ref: VMEM (tm, 128)   f32   lane t = log-prob of target t
    # acc_ref: VMEM (tm, n_pad) f32   logits accumulator (resident across k axis)
    k = pl.program_id(1)

    @pl.when(k == 0)
    def _():
        acc_ref[...] = jnp.zeros_like(acc_ref)

    acc_ref[...] += jnp.dot(x_ref[...], w_ref[...],
                            preferred_element_type=jnp.float32)

    @pl.when(k == pl.num_programs(1) - 1)
    def _():
        logits = acc_ref[...] + b_ref[...]                       # (tm, n_pad) f32
        # log(softmax) == logits - logsumexp(logits), stable. Padded classes
        # have logits ~ -1e30 -> exp underflows to 0, logsumexp unaffected.
        m = jnp.max(logits, axis=1, keepdims=True)
        lse = m + jnp.log(jnp.sum(jnp.exp(logits - m), axis=1, keepdims=True))
        log_probs = logits - lse                                 # (tm, n_pad) f32

        # One-hot gather on the MXU (idle during the epilogue): column t of
        # `onehot` selects class tgt_ref[0, t]; padding lanes (-1) select nothing.
        n_pad = acc_ref.shape[1]
        cls_idx = jax.lax.broadcasted_iota(jnp.int32, (n_pad, LANE), 0)
        onehot = (cls_idx == tgt_ref[...]).astype(jnp.float32)   # (n_pad, 128)
        out_ref[...] = jnp.dot(log_probs, onehot,
                               preferred_element_type=jnp.float32)


# ----------------------------------------------------------------------------
# One-time head preparation (fold Normalize, pad, cast) — hoisted out of forward
# ----------------------------------------------------------------------------
def prepare_classifier_head(params, *, image_mean, image_std, proc_hw, num_channels):
    """Fold Normalize(mean, std) into the linear head and pad to TPU tiles.

    (x - mean)/std @ W + b  ==  x @ (invstd*W) + (b - (mean*invstd) @ W)
    Call once; the returned dict is reused by every forward call.
    """
    ph, pw = proc_hw
    C = num_channels
    D = C * ph * pw
    num_classes = int(params["b"].shape[0])

    mean_flat = jnp.broadcast_to(
        jnp.asarray(image_mean, jnp.float32)[:, None, None], (C, ph, pw)).reshape(D)
    invstd_flat = jnp.broadcast_to(
        1.0 / jnp.asarray(image_std, jnp.float32)[:, None, None], (C, ph, pw)).reshape(D)
    w_fold = invstd_flat[:, None] * params["w"]                     # (D, N)
    b_fold = params["b"] - (mean_flat * invstd_flat) @ params["w"]  # (N,)

    # --- TPU-friendly padding -------------------------------------------------
    n_pad = _round_up(num_classes, LANE)            # lane-dense class dim
    d_pad128 = _round_up(D, LANE)

    # K tile budget: double-buffered (tk, n_pad) bf16 W tiles must fit ~8 MiB so
    # the auto-pipeline stays double-buffered within v5e's 16 MiB default scoped
    # VMEM (and well under v7x's 64 MiB physical VMEM).
    w_dbuf_budget = 8 * 1024 * 1024
    tk_cap = max(LANE, min(2048, (w_dbuf_budget // (4 * n_pad)) // LANE * LANE))
    if d_pad128 <= tk_cap:
        # Whole W fits the budget: collapse the K grid -> W stays resident in
        # VMEM across batch tiles (one HBM pass over W total).
        tk = d_pad128
        d_pad = d_pad128
    else:
        # Minimal-padding K split: waste stays under one 128-row tile.
        n_k = _cdiv(d_pad128, tk_cap)
        tk = _round_up(_cdiv(d_pad128, n_k), LANE)
        d_pad = n_k * tk
    # TODO(synk): for very large heads (n_pad >~ 8k) add an N (class) tile axis
    # with an online logsumexp; acc and the W tile currently scale with n_pad.

    w_p = (jnp.zeros((d_pad, n_pad), jnp.bfloat16)
           .at[:D, :num_classes].set(w_fold.astype(jnp.bfloat16)))
    bias_p = (jnp.full((1, n_pad), -1e30, jnp.float32)
              .at[0, :num_classes].set(b_fold))

    return {
        "w": w_p, "b": bias_p,
        "D": D, "d_pad": d_pad, "tk": tk, "n_pad": n_pad,
        "num_classes": num_classes, "proc_hw": proc_hw,
    }


# ----------------------------------------------------------------------------
# Jitted forward (resize + pad + cast + pallas_call + slice fuse under one jit)
# ----------------------------------------------------------------------------
@functools.partial(jax.jit,
                   static_argnames=("proc_hw", "D", "d_pad", "tk", "n_pad", "T"))
def _forward_jit(x_nchw, w_p, bias_p, targets_arr, *,
                 proc_hw, D, d_pad, tk, n_pad, T):
    B, C, H, W = x_nchw.shape
    ph, pw = proc_hw

    # --- glue: Resize([ph, pw]) ---
    # TODO(synk): torchvision Resize on tensors defaults to antialias=True;
    # jax.image.resize has no antialias, so downscaled values can differ.
    resized = jax.image.resize(x_nchw, (B, C, ph, pw), method="bilinear")
    feats = resized.reshape(B, D).astype(jnp.bfloat16)

    tm = min(_round_up(B, 16), 256)       # bf16 sublane-packed; 256 fills v6e/v7x MXU
    b_rows = _round_up(B, tm)
    feats_p = jnp.zeros((b_rows, d_pad), jnp.bfloat16).at[:B, :D].set(feats)

    # Targets packed into lanes of a tiny (1, 128) int32 vector; padding = -1.
    tgt_lanes = jnp.full((1, LANE), -1, jnp.int32).at[0, :T].set(targets_arr)

    grid = (b_rows // tm, d_pad // tk)

    # Explicit scoped-VMEM limit: double-buffered W + x tiles, f32 accumulator,
    # epilogue temporaries + slack; clamped under v7x's 64 MiB physical VMEM.
    vmem_need = (2 * tk * n_pad * 2 + 2 * tm * tk * 2
                 + 2 * tm * n_pad * 4 + (2 << 20))
    vmem_limit = int(min(max(vmem_need, 16 << 20), 48 << 20))

    out = pl.pallas_call(
        _head_kernel,
        out_shape=jax.ShapeDtypeStruct((b_rows, LANE), jnp.float32),
        grid_spec=pltpu.PrefetchScalarGridSpec(
            num_scalar_prefetch=0,
            grid=grid,
            in_specs=[
                pl.BlockSpec((tm, tk), lambda b, k: (b, k)),      # x
                pl.BlockSpec((tk, n_pad), lambda b, k: (k, 0)),   # W (folded)
                pl.BlockSpec((1, n_pad), lambda b, k: (0, 0)),    # bias (folded)
                pl.BlockSpec((1, LANE), lambda b, k: (0, 0)),     # target lanes
            ],
            out_specs=pl.BlockSpec((tm, LANE), lambda b, k: (b, 0)),
            scratch_shapes=[pltpu.VMEM((tm, n_pad), jnp.float32)],  # logits acc
        ),
        compiler_params=pltpu.CompilerParams(
            dimension_semantics=("parallel", "arbitrary"),
            vmem_limit_bytes=vmem_limit,
        ),
    )(feats_p, w_p, bias_p, tgt_lanes)

    sel = out[:B, :T]                     # (B, T) — lane t = log-prob of target t
    return sel.T                          # (T, B)


def huggingface_classifier_forward(x_nchw, head, targets):
    """Replicates HuggingfaceClassifier.forward.

    x_nchw: (B, C, H, W) float32. targets: int or sequence of ints.
    Returns (B,) for an int target, (len(targets)*B,) for a list of targets.
    Note: target ids are not range-checked (matches the original module).
    """
    targets_arr = jnp.asarray(targets, jnp.int32).reshape(-1)
    T = int(targets_arr.shape[0])
    assert T <= LANE  # TODO(synk): tile the target axis if ever T > 128
    sel = _forward_jit(x_nchw, head["w"], head["b"], targets_arr,
                       proc_hw=head["proc_hw"], D=head["D"], d_pad=head["d_pad"],
                       tk=head["tk"], n_pad=head["n_pad"], T=T)
    if isinstance(targets, int):
        return sel[0]                     # int-target branch: (B,)
    return sel.reshape(-1)                # list branch: torch.cat -> (T*B,)


def make_params(key, in_dim, num_classes):
    kw, kb = jax.random.split(key)
    w = jax.random.normal(kw, (in_dim, num_classes), jnp.float32) * 0.02
    b = jax.random.normal(kb, (num_classes,), jnp.float32) * 0.01
    return {"w": w, "b": b}


if __name__ == "__main__":
    # Small deterministic config: batch=2, RGB, 16x16 input, resize to 8x8,
    # 10 classes; both the int-target and list-of-targets branches are run.
    B, C, H, W = 2, 3, 16, 16
    PROC_HW = (8, 8)
    NUM_CLASSES = 10
    TARGET = 3
    TARGET_LIST = (3, 7)
    IMAGE_MEAN = (0.5, 0.5, 0.5)
    IMAGE_STD = (0.5, 0.5, 0.5)

    key = jax.random.PRNGKey(0)
    kx, kp = jax.random.split(key)
    x = jax.random.uniform(kx, (B, C, H, W), jnp.float32)      # image in [0, 1]
    params = make_params(kp, C * PROC_HW[0] * PROC_HW[1], NUM_CLASSES)

    # One-time prep (fold Normalize into the head, pad, bf16-cast).
    head = prepare_classifier_head(
        params, image_mean=IMAGE_MEAN, image_std=IMAGE_STD,
        proc_hw=PROC_HW, num_channels=C)
    head = jax.tree_util.tree_map(
        lambda a: jax.block_until_ready(a) if isinstance(a, jax.Array) else a, head)

    sel_int = jax.block_until_ready(
        huggingface_classifier_forward(x, head, TARGET))
    sel_list = jax.block_until_ready(
        huggingface_classifier_forward(x, head, TARGET_LIST))

    # Pure-JAX f32 reference of the module forward.
    resized = jax.image.resize(x, (B, C, *PROC_HW), method="bilinear")
    norm = (resized - jnp.asarray(IMAGE_MEAN)[None, :, None, None]) / \
        jnp.asarray(IMAGE_STD)[None, :, None, None]
    logits_ref = norm.reshape(B, -1) @ params["w"] + params["b"]
    logp_ref = jax.nn.log_softmax(logits_ref, axis=1)
    ref_int = logp_ref[jnp.arange(B), TARGET]
    ref_list = jnp.concatenate(
        [logp_ref[jnp.arange(B), t] for t in TARGET_LIST], axis=0)

    assert sel_int.shape == (B,)
    assert sel_list.shape == (len(TARGET_LIST) * B,)
    # bf16 MXU inputs -> slightly loose tolerance vs. the pure-f32 reference.
    assert jnp.allclose(sel_int, ref_int, atol=5e-2, rtol=0), (sel_int, ref_int)
    assert jnp.allclose(sel_list, ref_list, atol=5e-2, rtol=0), (sel_list, ref_list)

    print("KERNEL_OK")
</pallas_src>

<mosaic_0001>
module attributes {stable_mosaic.version = 11 : i64} {
  func.func @_head_kernel(%arg0: i32, %arg1: i32, %arg2: memref<16x256xbf16, #tpu.memory_space<vmem>>, %arg3: memref<256x128xbf16, #tpu.memory_space<vmem>>, %arg4: memref<1x128xf32, #tpu.memory_space<vmem>>, %arg5: memref<1x128xi32, #tpu.memory_space<vmem>>, %arg6: memref<16x128xf32, #tpu.memory_space<vmem>>, %arg7: memref<16x128xf32, #tpu.memory_space<vmem>>) attributes {dimension_semantics = [#tpu.dimension_semantics<parallel>, #tpu.dimension_semantics<arbitrary>], iteration_bounds = array<i64: 1, 1>, scalar_prefetch = 0 : i64, scratch_operands = 1 : i64, tpu.core_type = #tpu.core_type<tc>, window_params = [{transform_indices = @transform_0, window_bounds = array<i64: 16, 256>}, {transform_indices = @transform_1, window_bounds = array<i64: 256, 128>}, {pipeline_mode = #tpu.pipeline_mode<synchronous>, transform_indices = @transform_2, window_bounds = array<i64: 1, 128>}, {pipeline_mode = #tpu.pipeline_mode<synchronous>, transform_indices = @transform_3, window_bounds = array<i64: 1, 128>}, {transform_indices = @transform_4, window_bounds = array<i64: 16, 128>}]} {
    %c0_i32 = arith.constant 0 : i32
    %0 = arith.cmpi eq, %arg1, %c0_i32 : i32
    %1 = arith.extui %0 : i1 to i32
    %c0_i32_0 = arith.constant 0 : i32
    %2 = arith.cmpi ne, %1, %c0_i32_0 : i32
    scf.if %2 {
      %cst_10 = arith.constant 0.000000e+00 : f32
      %12 = vector.broadcast %cst_10 : f32 to vector<16x128xf32>
      %c0_11 = arith.constant 0 : index
      %c0_12 = arith.constant 0 : index
      %13 = vector.load %arg7[%c0_11, %c0_12] : memref<16x128xf32, #tpu.memory_space<vmem>>, vector<16x128xf32>
      tpu.vector_store %arg7[%c0_11, %c0_12], %12 {strides = array<i32>} : memref<16x128xf32, #tpu.memory_space<vmem>>, vector<16x128xf32>,
    } else {
    }
    %c0 = arith.constant 0 : index
    %c0_1 = arith.constant 0 : index
    %3 = vector.load %arg7[%c0, %c0_1] : memref<16x128xf32, #tpu.memory_space<vmem>>, vector<16x128xf32>
    %c0_2 = arith.constant 0 : index
    %c0_3 = arith.constant 0 : index
    %4 = vector.load %arg2[%c0_2, %c0_3] : memref<16x256xbf16, #tpu.memory_space<vmem>>, vector<16x256xbf16>
    %c0_4 = arith.constant 0 : index
    %c0_5 = arith.constant 0 : index
    %5 = vector.load %arg3[%c0_4, %c0_5] : memref<256x128xbf16, #tpu.memory_space<vmem>>, vector<256x128xbf16>
    %cst = arith.constant dense<0.000000e+00> : vector<16x128xf32>
    %6 = tpu.matmul %4, %5, %cst {dimension_numbers = #tpu.dot_dimension_numbers<[1], [0], [0], [1], [0, 0, 1, 1], [], []>} : vector<16x256xbf16>, vector<256x128xbf16>, vector<16x128xf32> -> vector<16x128xf32>
    %7 = arith.addf %3, %6 : vector<16x128xf32>
    %c0_6 = arith.constant 0 : index
    %c0_7 = arith.constant 0 : index
    %8 = vector.load %arg7[%c0_6, %c0_7] : memref<16x128xf32, #tpu.memory_space<vmem>>, vector<16x128xf32>
    tpu.vector_store %arg7[%c0_6, %c0_7], %7 {strides = array<i32>} : memref<16x128xf32, #tpu.memory_space<vmem>>, vector<16x128xf32>,
    %c0_i32_8 = arith.constant 0 : i32
    %9 = arith.cmpi eq, %arg1, %c0_i32_8 : i32
    %10 = arith.extui %9 : i1 to i32
    %c0_i32_9 = arith.constant 0 : i32
    %11 = arith.cmpi ne, %10, %c0_i32_9 : i32
    scf.if %11 {
      %c0_10 = arith.constant 0 : index
      %c0_11 = arith.constant 0 : index
      %12 = vector.load %arg7[%c0_10, %c0_11] : memref<16x128xf32, #tpu.memory_space<vmem>>, vector<16x128xf32>
      %c0_12 = arith.constant 0 : index
      %c0_13 = arith.constant 0 : index
      %13 = vector.load %arg4[%c0_12, %c0_13] : memref<1x128xf32, #tpu.memory_space<vmem>>, vector<1x128xf32>
      %14 = vector.broadcast %13 : vector<1x128xf32> to vector<16x128xf32>
      %15 = arith.addf %12, %14 : vector<16x128xf32>
      %cst_14 = arith.constant dense<0xFF800000> : vector<16xf32>
      %16 = vector.multi_reduction <maximumf>, %15, %cst_14 [1] : vector<16x128xf32> to vector<16xf32>
      %17 = vector.shape_cast %16 : vector<16xf32> to vector<16x1xf32>
      %18 = vector.broadcast %17 : vector<16x1xf32> to vector<16x128xf32>
      %19 = arith.subf %15, %18 : vector<16x128xf32>
      %20 = math.exp %19 : vector<16x128xf32>
      %cst_15 = arith.constant dense<0.000000e+00> : vector<16xf32>
      %21 = vector.multi_reduction <add>, %20, %cst_15 [1] : vector<16x128xf32> to vector<16xf32>
      %22 = vector.shape_cast %21 : vector<16xf32> to vector<16x1xf32>
      %23 = math.log %22 : vector<16x1xf32>
      %24 = arith.addf %17, %23 : vector<16x1xf32>
      %25 = vector.broadcast %24 : vector<16x1xf32> to vector<16x128xf32>
      %26 = arith.subf %15, %25 : vector<16x128xf32>
      %27 = tpu.iota {dimensions = array<i32: 0>} : vector<128x128xi32>
      %c0_16 = arith.constant 0 : index
      %c0_17 = arith.constant 0 : index
      %28 = vector.load %arg5[%c0_16, %c0_17] : memref<1x128xi32, #tpu.memory_space<vmem>>, vector<1x128xi32>
      %29 = vector.broadcast %28 : vector<1x128xi32> to vector<128x128xi32>
      %30 = arith.cmpi eq, %27, %29 : vector<128x128xi32>
      %31 = arith.extui %30 : vector<128x128xi1> to vector<128x128xi32>
      %32 = arith.sitofp %31 : vector<128x128xi32> to vector<128x128xf32>
      %cst_18 = arith.constant dense<0.000000e+00> : vector<16x128xf32>
      %33 = tpu.matmul %26, %32, %cst_18 {dimension_numbers = #tpu.dot_dimension_numbers<[1], [0], [0], [1], [0, 0, 1, 1], [], []>} : vector<16x128xf32>, vector<128x128xf32>, vector<16x128xf32> -> vector<16x128xf32>
      %c0_19 = arith.constant 0 : index
      %c0_20 = arith.constant 0 : index
      %34 = vector.load %arg6[%c0_19, %c0_20] : memref<16x128xf32, #tpu.memory_space<vmem>>, vector<16x128xf32>
      tpu.vector_store %arg6[%c0_19, %c0_20], %33 {strides = array<i32>} : memref<16x128xf32, #tpu.memory_space<vmem>>, vector<16x128xf32>,
    } else {
    }
    return
  }
  func.func @transform_0(%arg0: i32, %arg1: i32) -> (i32, i32) {
    %c0_i32 = arith.constant 0 : i32
    return %arg0, %arg1 : i32, i32
  }
  func.func @transform_1(%arg0: i32, %arg1: i32) -> (i32, i32) {
    %c0_i32 = arith.constant 0 : i32
    %c0_i32_0 = arith.constant 0 : i32
    return %arg1, %c0_i32 : i32, i32
  }
  func.func @transform_2(%arg0: i32, %arg1: i32) -> (i32, i32) {
    %c0_i32 = arith.constant 0 : i32
    %c0_i32_0 = arith.constant 0 : i32
    %c0_i32_1 = arith.constant 0 : i32
    return %c0_i32, %c0_i32_0 : i32, i32
  }
  func.func @transform_3(%arg0: i32, %arg1: i32) -> (i32, i32) {
    %c0_i32 = arith.constant 0 : i32
    %c0_i32_0 = arith.constant 0 : i32
    %c0_i32_1 = arith.constant 0 : i32
    return %c0_i32, %c0_i32_0 : i32, i32
  }
  func.func @transform_4(%arg0: i32, %arg1: i32) -> (i32, i32) {
    %c0_i32 = arith.constant 0 : i32
    %c0_i32_0 = arith.constant 0 : i32
    return %arg0, %c0_i32 : i32, i32
  }
}

</mosaic_0001>

<bundles_post_ra>
// kernel: _forward_jit.1
= control target key start
LH: loop header
LB: loop body
LE: loop exit
PB: predicated region body
PF: predicated region fallthrough
CT: control target
= control target key end

     0   :  { %v230_v31 = vlaneseq  ;;  %v459_v38 = vmov 1.0   ;;  %s567_s1 = inlined_call_operand.vmem [shape: bf16[256,128], index: 1, kind: input, shape index: {}]   ;;  %s568_s0 = inlined_call_operand.vmem [shape: bf16[16,256], index: 0, kind: input, shape index: {}]   ;;  %s569_s2 = inlined_call_operand.vmem [shape: f32[1,128], index: 2, kind: input, shape index: {}]   ;;  %s570_s3 = inlined_call_operand.vmem [shape: s32[1,128], index: 3, kind: input, shape index: {}]   ;;  %s571_s4 = inlined_call_operand.vmem [shape: f32[16,128], index: 4, kind: output, shape index: {}]  }
   0x1   :  { %v439_v0 = vld [vmem:[%s567_s1 + $0x38] sm:$0xff]  ;;  %v438_v2 = vld [vmem:[%s567_s1 + $0x30] sm:$0xff]  ;;  %v437_v4 = vld [vmem:[%s567_s1 + $0x28] sm:$0xff] }
   0x2   :  { %v447_v1 = vld [vmem:[%s567_s1 + $0x78] sm:$0xff]  ;;  %165 = vmatpush.bf16.msra.mxu0 %v439_v0  ;;  %v446_v3 = vld [vmem:[%s567_s1 + $0x70] sm:$0xff]  ;;  %v445_v5 = vld [vmem:[%s567_s1 + $0x68] sm:$0xff]  ;;  %v231_v32 = vshrl.u32 %v230_v31, 7 }
   0x3   :  { %179 = vmatpush.bf16.msra.mxu1 %v447_v1  ;;  %v436_v6 = vld [vmem:[%s567_s1 + $0x20] sm:$0xff]  ;;  %v435_v8 = vld [vmem:[%s567_s1 + $0x18] sm:$0xff]  ;;  %v434_v10 = vld [vmem:[%s567_s1 + $0x10] sm:$0xff] }
   0x4   :  { %v444_v7 = vld [vmem:[%s567_s1 + $0x60] sm:$0xff]  ;;  %v443_v9 = vld [vmem:[%s567_s1 + $0x58] sm:$0xff]  ;;  %v442_v11 = vld [vmem:[%s567_s1 + $0x50] sm:$0xff]  ;;  %v246_v34 = vadd.s32 120, %v231_v32  ;;  %v245_v35 = vadd.s32 112, %v231_v32  ;;  %v244_v36 = vadd.s32 104, %v231_v32 }
   0x5   :  { %v433_v12 = vld [vmem:[%s567_s1 + $0x8] sm:$0xff]  ;;  %v432_v14 = vld [vmem:[%s567_s1] sm:$0xff]  ;;  %v243_v37 = vadd.s32 96, %v231_v32  ;;  %v242_v39 = vadd.s32 88, %v231_v32  ;;  %v241_v40 = vadd.s32 80, %v231_v32  ;;  %v240_v42 = vadd.s32 72, %v231_v32 }
   0x6   :  { %166 = vmatpush.bf16.msra.mxu0 %v438_v2  ;;  %v441_v13 = vld [vmem:[%s567_s1 + $0x48] sm:$0xff]  ;;  %v440_v15 = vld [vmem:[%s567_s1 + $0x40] sm:$0xff]  ;;  %v239_v44 = vadd.s32 64, %v231_v32  ;;  %v238_v46 = vadd.s32 56, %v231_v32  ;;  %v237_v52 = vadd.s32 48, %v231_v32  ;;  %v236_v53 = vadd.s32 40, %v231_v32 }
   0x7   :  { %180 = vmatpush.bf16.msra.mxu1 %v446_v3  ;;  %v328_v16 = vld [vmem:[%s568_s0] sm:$0xf]  ;;  %v431_v17 = vld [vmem:[%s568_s0 + $0x4] sm:$0xf0]  ;;  %v430_v18 = vld [vmem:[%s568_s0 + $0x4] sm:$0xf] }
   0x8   :  { %v330_v19 = vld [vmem:[%s568_s0 + $0x8] sm:$0xf0]  ;;  %v329_v20 = vor.u32 %v431_v17, %v328_v16  ;;  %v449_v22 = vld [vmem:[%s569_s2] ss:$0 sm:$0xff]  ;;  %v235_v54 = vadd.s32 32, %v231_v32  ;;  %v234_v55 = vadd.s32 24, %v231_v32 }
   0x9   :  { %v333_v21 = vor.u32 %v430_v18, %v330_v19  ;;  %v450_v33 = vld [vmem:[%s570_s3] ss:$0 sm:$0xff]  ;;  %v233_v56 = vadd.s32 16, %v231_v32  ;;  %v232_v57 = vadd.s32 8, %v231_v32 }
   0xa   :  { %167 = vmatpush.bf16.msra.mxu0 %v437_v4  ;;  %vm264_vm0 = vcmp.eq.s32.totalorder %v246_v34, %v450_v33  ;;  %vm263_vm1 = vcmp.eq.s32.totalorder %v245_v35, %v450_v33  ;;  %vm262_vm2 = vcmp.eq.s32.totalorder %v244_v36, %v450_v33  ;;  %vm261_vm3 = vcmp.eq.s32.totalorder %v243_v37, %v450_v33 }
   0xb   :  { %181 = vmatpush.bf16.msra.mxu1 %v445_v5  ;;  %414 = vmatpush.msk.msra.mxu2 %vm264_vm0, %v459_v38  ;;  %vm260_vm4 = vcmp.eq.s32.totalorder %v242_v39, %v450_v33  ;;  %vm259_vm5 = vcmp.eq.s32.totalorder %v241_v40, %v450_v33  ;;  %vm258_vm6 = vcmp.eq.s32.totalorder %v240_v42, %v450_v33 }
   0xc   :  { %vm257_vm7 = vcmp.eq.s32.totalorder %v239_v44, %v450_v33  ;;  %vm256_vm8 = vcmp.eq.s32.totalorder %v238_v46, %v450_v33  ;;  %vm255_vm9 = vcmp.eq.s32.totalorder %v237_v52, %v450_v33  ;;  %vm254_vm10 = vcmp.eq.s32.totalorder %v236_v53, %v450_v33 }
   0xd   :  { %415 = vmatpush.msk.msra.mxu2 %vm263_vm1, %v459_v38  ;;  %vm253_vm11 = vcmp.eq.s32.totalorder %v235_v54, %v450_v33  ;;  %vm252_vm12 = vcmp.eq.s32.totalorder %v234_v55, %v450_v33  ;;  %vm251_vm13 = vcmp.eq.s32.totalorder %v233_v56, %v450_v33  ;;  %vm250_vm14 = vcmp.eq.s32.totalorder %v232_v57, %v450_v33 }
   0xe   :  { %168 = vmatpush.bf16.msra.mxu0 %v436_v6  ;;  %vm249_vm15 = vcmp.eq.s32.totalorder %v231_v32, %v450_v33 }
   0xf   :  { %182 = vmatpush.bf16.msra.mxu1 %v444_v7  ;;  %416 = vmatpush.msk.msra.mxu2 %vm262_vm2, %v459_v38 }
  0x11   :  { %417 = vmatpush.msk.msra.mxu2 %vm261_vm3, %v459_v38 }
  0x12   :  { %169 = vmatpush.bf16.msra.mxu0 %v435_v8 }
  0x13   :  { %183 = vmatpush.bf16.msra.mxu1 %v443_v9  ;;  %418 = vmatpush.msk.msra.mxu2 %vm260_vm4, %v459_v38 }
  0x15   :  { %419 = vmatpush.msk.msra.mxu2 %vm259_vm5, %v459_v38 }
  0x16   :  { %170 = vmatpush.bf16.msra.mxu0 %v434_v10 }
  0x17   :  { %184 = vmatpush.bf16.msra.mxu1 %v442_v11  ;;  %420 = vmatpush.msk.msra.mxu2 %vm258_vm6, %v459_v38 }
  0x19   :  { %421 = vmatpush.msk.msra.mxu2 %vm257_vm7, %v459_v38 }
  0x1a   :  { %171 = vmatpush.bf16.msra.mxu0 %v433_v12 }
  0x1b   :  { %185 = vmatpush.bf16.msra.mxu1 %v441_v13  ;;  %422 = vmatpush.msk.msra.mxu2 %vm256_vm8, %v459_v38 }
  0x1d   :  { %423 = vmatpush.msk.msra.mxu2 %vm255_vm9, %v459_v38 }
  0x1e   :  { %172 = vmatpush.bf16.msra.mxu0 %v432_v14 }
  0x1f   :  { %186 = vmatpush.bf16.msra.mxu1 %v440_v15  ;;  %424 = vmatpush.msk.msra.mxu2 %vm254_vm10, %v459_v38 }
  0x21   :  { %173 = vmatmul.bf16.vlgmr.msra.gmra.mxu0 %v329_v20  ;;  %425 = vmatpush.msk.msra.mxu2 %vm253_vm11, %v459_v38 }
  0x22   :  { %187 = vmatmul.bf16.vlgmr.msra.gmra.mxu1 %v333_v21 }
  0x23   :  { %426 = vmatpush.msk.msra.mxu2 %vm252_vm12, %v459_v38 }
  0x25   :  { %427 = vmatpush.msk.msra.mxu2 %vm251_vm13, %v459_v38 }
  0x27   :  { %428 = vmatpush.msk.msra.mxu2 %vm250_vm14, %v459_v38 }
  0x29   :  { %429 = vmatpush.msk.msra.mxu2 %vm249_vm15, %v459_v38 }
  0x9e   :  { %v174_v23 = vpop.f32.mrf.mxu0 }
  0x9f   :  { %v188_v24 = vpop.f32.mrf.mxu1 }
  0xa0   :  { %v189_v25 = vadd.f32 %v188_v24, %v174_v23 }
  0xa2   :  { %v548_v26 = vadd.f32 %v449_v22, %v189_v25 }
  0xa4   :  { %208 = vmax.xlane.f32.xlu0 %v548_v26 }
  0xa6   :  { %v176_v27 = vpop.f32.mrf.mxu0 }
  0xa7   :  { %v190_v28 = vpop.f32.mrf.mxu1 }
  0xa8   :  { %v191_v29 = vadd.f32 %v190_v28, %v176_v27 }
  0xaa   :  { %v551_v30 = vadd.f32 %v449_v22, %v191_v29 }
  0xac   :  { %210 = vmax.xlane.f32.xlu0 %v551_v30 }
 0x117   :  { %v209_v41 = vpop.xlane.xlu0 %208 }
 0x118   :  { %v212_v43 = vsub.f32 %v548_v26, %v209_v41 }
 0x11a   :  { %v214_v45 = vmul.f32 1.442695, %v212_v43 }
 0x11c   :  { %451 = vpow2.f32 %v214_v45 }
 0x11f   :  { %v211_v47 = vpop.xlane.xlu0 %210 }
 0x120   :  { %v213_v48 = vsub.f32 %v551_v30, %v211_v47 }
 0x122   :  { %v452_v49 = vpop.eup %451  ;;  %v216_v50 = vmul.f32 1.442695, %v213_v48 }
 0x123   :  { %218 = vadd.xlane.f32.xlu1 %v452_v49 }
 0x124   :  { %453 = vpow2.f32 %v216_v50 }
 0x12a   :  { %v454_v51 = vpop.eup %453 }
 0x12b   :  { %220 = vadd.xlane.f32.xlu1 %v454_v51 }
 0x196   :  { %v219_v58 = vpop.xlane.xlu1 %218 }
 0x197   :  { %455 = vlog2.f32 %v219_v58 }
 0x19d   :  { %v456_v59 = vpop.eup %455 }
 0x19e   :  { %v223_v60 = vmul.f32 0.6931472, %v456_v59  ;;  %v221_v61 = vpop.xlane.xlu1 %220 }
 0x19f   :  { %457 = vlog2.f32 %v221_v61 }
 0x1a0   :  { %v226_v62 = vadd.f32 %v223_v60, %v209_v41 }
 0x1a2   :  { %v228_v63 = vsub.f32 %v548_v26, %v226_v62 }
 0x1a4   :  { %313 = vmatmul.f32.vlgmr.msra.gmra.mxu2 %v228_v63 }
 0x1a5   :  { %v458_v0 = vpop.eup %457 }
 0x1a6   :  { %v225_v1 = vmul.f32 0.6931472, %v458_v0 }
 0x1a8   :  { %v227_v2 = vadd.f32 %v225_v1, %v211_v47 }
 0x1aa   :  { %v229_v3 = vsub.f32 %v551_v30, %v227_v2 }
 0x1ac   :  { %316 = vmatmul.f32.gmra.mxu2 %v229_v3 }
 0x227   :  { %v314_v4 = vpop.f32.mrf.mxu2 }
 0x228   :  { %320 = vst [vmem:[%s571_s4] sm:$0xff] %v314_v4 }
 0x22f   :  { %v317_v5 = vpop.f32.mrf.mxu2 }
 0x230   :  { %321 = vst [vmem:[%s571_s4 + $0x8] sm:$0xff] %v317_v5 }

</bundles_post_ra>
